<compile_context>
chip_gen: v5e
topology: v5e:2x2
jax: 0.10.0
libtpu: 0.0.40
codegen_flags: <defaults>
</compile_context>

<pallas_src>
import functools

import jax
import jax.numpy as jnp
from jax.experimental import pallas as pl
from jax.experimental.pallas import tpu as pltpu


_CONV_VMEM_LIMIT = 48 * 1024 * 1024   # ample on v5e/v6e, safe on v7x (64 MiB)


# ----------------------------------------------------------------------------
# Helpers
# ----------------------------------------------------------------------------
def _largest_divisor_leq(n, target):
    """Largest divisor of n that is <= target (>= 1)."""
    t = max(1, min(n, int(target)))
    while n % t:
        t -= 1
    return t


# ----------------------------------------------------------------------------
# Fused 3x3 conv + bias + ReLU kernel (generic, Cin >= 64)
# ----------------------------------------------------------------------------
def _conv3x3_kernel(x_ref, w_ref, b_ref, o_ref):
    # x_ref: (H+2, W+2, Cin) whole padded image (resident across row tiles)
    # w_ref: (9, Cin, tn)    tap-major weights (resident across rows & batch)
    # b_ref: (1, tn) f32
    # o_ref: (tr, W, tn)
    tr, n_w, tn = o_ref.shape
    cin = x_ref.shape[-1]
    r0 = pl.program_id(2) * tr                      # first output row of tile

    acc = jnp.zeros((tr * n_w, tn), jnp.float32)
    for dy in range(3):
        x = x_ref[pl.ds(r0 + dy, tr)]               # (tr, W+2, Cin) from VMEM
        for dx in range(3):
            patch = x[:, dx:dx + n_w, :].reshape(tr * n_w, cin)
            acc = acc + jnp.dot(patch, w_ref[3 * dy + dx],
                                preferred_element_type=jnp.float32)
    y = jnp.maximum(acc + b_ref[...], 0.0)
    o_ref[...] = y.reshape(tr, n_w, tn).astype(o_ref.dtype)


def conv3x3_relu_nhwc(x, w9, b_row):
    """Fused ReLU(conv3x3(x) + b) in NHWC; bf16 operands, f32 accumulation."""
    N, H, W, Cin = x.shape
    Cout = w9.shape[-1]
    xp = jnp.pad(x, ((0, 0), (1, 1), (1, 1), (0, 0)))   # single padded copy

    tn = Cout if Cout <= 256 else 256
    # ~2 MiB of bf16 output per row tile (512..8192 output pixels).
    target_px = int(min(8192, max(512, (2 << 20) // (2 * tn))))
    tr = _largest_divisor_leq(H, max(1, target_px // max(W, 1)))
    # Degenerate-factorization guard (e.g. prime H): take whole image if cheap.
    if tr * W < 256 and H > tr and H * W * tn * 4 <= (8 << 20):
        tr = H
    # Keep >=4 grid steps on tiny-spatial deep layers (megacore / pipelining).
    if (Cout // tn) * N * (H // tr) < 4 and Cout >= 256:
        tn = 128

    grid = (Cout // tn, N, H // tr)                  # Cout outermost -> weights resident

    out = pl.pallas_call(
        _conv3x3_kernel,
        out_shape=jax.ShapeDtypeStruct((N, H, W, Cout), jnp.bfloat16),
        grid_spec=pltpu.PrefetchScalarGridSpec(
            num_scalar_prefetch=0,
            grid=grid,
            in_specs=[
                pl.BlockSpec((None, H + 2, W + 2, Cin), lambda j, n, i: (n, 0, 0, 0)),
                pl.BlockSpec((9, Cin, tn), lambda j, n, i: (0, 0, j)),
                pl.BlockSpec((1, tn), lambda j, n, i: (0, j)),
            ],
            out_specs=pl.BlockSpec((None, tr, W, tn), lambda j, n, i: (n, i, 0, j)),
        ),
        compiler_params=pltpu.CompilerParams(
            dimension_semantics=("parallel", "parallel", "parallel"),
            vmem_limit_bytes=_CONV_VMEM_LIMIT,
        ),
    )(xp, w9, b_row)
    return out


# ----------------------------------------------------------------------------
# First conv (Cin=3): im2col to K=27 + fused matmul kernel
# ----------------------------------------------------------------------------
def _im2col_conv_kernel(x_ref, w_ref, b_ref, o_ref):
    # x_ref: (tr, W, K) bf16; w_ref: (K, tn) bf16; b_ref: (1, tn) f32
    tr, n_w, k = x_ref.shape
    tn = o_ref.shape[-1]
    x = x_ref[...].reshape(tr * n_w, k)
    acc = jnp.dot(x, w_ref[...], preferred_element_type=jnp.float32)
    y = jnp.maximum(acc + b_ref[...], 0.0)
    o_ref[...] = y.reshape(tr, n_w, tn).astype(o_ref.dtype)


def conv3x3_relu_im2col(x, w9, b_row):
    """Same fused conv, for tiny Cin (the 3-channel input layer)."""
    N, H, W, Cin = x.shape
    Cout = w9.shape[-1]
    K = 9 * Cin
    xp = jnp.pad(x, ((0, 0), (1, 1), (1, 1), (0, 0)))
    cols = [xp[:, dy:dy + H, dx:dx + W, :] for dy in range(3) for dx in range(3)]
    xi = jnp.concatenate(cols, axis=-1).reshape(N * H, W, K)      # (M, W, 27)
    wk = w9.reshape(K, Cout)                                      # tap-major

    M = N * H
    tn = Cout if Cout <= 256 else 256
    target_px = int(min(8192, max(512, (2 << 20) // (2 * tn))))
    tr = _largest_divisor_leq(M, max(1, target_px // max(W, 1)))
    grid = (Cout // tn, M // tr)

    out = pl.pallas_call(
        _im2col_conv_kernel,
        out_shape=jax.ShapeDtypeStruct((M, W, Cout), jnp.bfloat16),
        grid_spec=pltpu.PrefetchScalarGridSpec(
            num_scalar_prefetch=0,
            grid=grid,
            in_specs=[
                pl.BlockSpec((tr, W, K), lambda j, i: (i, 0, 0)),
                pl.BlockSpec((K, tn), lambda j, i: (0, j)),
                pl.BlockSpec((1, tn), lambda j, i: (0, j)),
            ],
            out_specs=pl.BlockSpec((tr, W, tn), lambda j, i: (i, 0, j)),
        ),
        compiler_params=pltpu.CompilerParams(
            dimension_semantics=("parallel", "parallel"),
            vmem_limit_bytes=_CONV_VMEM_LIMIT,
        ),
    )(xi, wk, b_row)
    return out.reshape(N, H, W, Cout)


# ----------------------------------------------------------------------------
# 2x2 / stride-2 pooling kernel (max or avg)
# ----------------------------------------------------------------------------
def _pool2x2_kernel(x_ref, o_ref, *, pool):
    # x_ref: (tho, 2, Wo, 2*C) -- dim1 = row pair; lane dim packs [even | odd] columns
    # o_ref: (tho, Wo, C)
    c = o_ref.shape[-1]
    x = x_ref[...]
    a = x[:, 0]                       # even rows   (tho, Wo, 2C)
    b = x[:, 1]                       # odd rows
    if pool == "max":
        m = jnp.maximum(a, b)
        o_ref[...] = jnp.maximum(m[..., :c], m[..., c:])
    else:                              # avg, summed in f32
        s = a.astype(jnp.float32) + b.astype(jnp.float32)
        o_ref[...] = ((s[..., :c] + s[..., c:]) * 0.25).astype(o_ref.dtype)


def pool2x2_nhwc(x, pool="max"):
    """2x2, stride-2 pooling (NHWC) as a Pallas kernel (even H, W required)."""
    N, H, W, C = x.shape
    assert H % 2 == 0 and W % 2 == 0, "pool2x2 expects even spatial dims"
    Ho, Wo = H // 2, W // 2
    # Metadata-only reshape: row pair -> leading dim, column pair -> lane dim.
    x4 = x.reshape(N * Ho, 2, Wo, 2 * C)
    Mo = N * Ho
    # ~2 MiB bf16 input block per grid step.
    tho = _largest_divisor_leq(Mo, max(1, (2 << 20) // max(1, 4 * W * C)))
    grid = (Mo // tho,)

    out = pl.pallas_call(
        functools.partial(_pool2x2_kernel, pool=pool),
        out_shape=jax.ShapeDtypeStruct((Mo, Wo, C), x.dtype),
        grid_spec=pltpu.PrefetchScalarGridSpec(
            num_scalar_prefetch=0,
            grid=grid,
            in_specs=[pl.BlockSpec((tho, 2, Wo, 2 * C), lambda i: (i, 0, 0, 0))],
            out_specs=pl.BlockSpec((tho, Wo, C), lambda i: (i, 0, 0)),
        ),
        compiler_params=pltpu.CompilerParams(
            dimension_semantics=("parallel",),
        ),
    )(x4)
    return out.reshape(N, Ho, Wo, C)


# ----------------------------------------------------------------------------
# Parameters & forward graph
# ----------------------------------------------------------------------------
# (output key, Cin, Cout); pool layers have Cin/Cout = None
VGG_LAYERS = [
    ("r11", 3, 64), ("r12", 64, 64), ("p1", None, None),
    ("r21", 64, 128), ("r22", 128, 128), ("p2", None, None),
    ("r31", 128, 256), ("r32", 256, 256), ("r33", 256, 256), ("r34", 256, 256),
    ("p3", None, None),
    ("r41", 256, 512), ("r42", 512, 512), ("r43", 512, 512), ("r44", 512, 512),
    ("p4", None, None),
    ("r51", 512, 512), ("r52", 512, 512), ("r53", 512, 512), ("r54", 512, 512),
    ("p5", None, None),
]


def init_params(key):
    """Deterministic He-style init; weights stored in PyTorch (Cout,Cin,3,3)."""
    params = {}
    for name, cin, cout in VGG_LAYERS:
        if cin is None:
            continue
        key, wk, bk = jax.random.split(key, 3)
        std = (2.0 / (9 * cin)) ** 0.5
        w = jax.random.normal(wk, (cout, cin, 3, 3), jnp.float32) * std
        b = jax.random.normal(bk, (cout,), jnp.float32) * 0.05
        params[name] = (w, b)
    return params


def prepare_params(params):
    """One-time prep: (Cout,Cin,3,3) fp32 -> (9,Cin,Cout) bf16 tap matrices
    ordered (dy, dx); bias -> (1, Cout) fp32 rows."""
    prepped = {}
    for name, (w, b) in params.items():
        cout, cin = w.shape[0], w.shape[1]
        w9 = jnp.transpose(w, (2, 3, 1, 0)).reshape(9, cin, cout)
        prepped[name] = (w9.astype(jnp.bfloat16),
                         b.reshape(1, cout).astype(jnp.float32))
    return prepped


def _vgg_forward_impl(prepped, x_nchw, *, out_keys, pool):
    # NCHW fp32 -> NHWC bf16 (fp32 accumulation inside the conv kernels).
    cur = jnp.transpose(x_nchw, (0, 2, 3, 1)).astype(jnp.bfloat16)
    out = {}
    for name, cin, cout in VGG_LAYERS:
        if cin is None:                       # pooling layer
            cur = pool2x2_nhwc(cur, pool=pool)
        elif cin <= 8:                        # 3-channel input conv (im2col)
            w9, b_row = prepped[name]
            cur = conv3x3_relu_im2col(cur, w9, b_row)
        else:                                 # fused conv+bias+relu
            w9, b_row = prepped[name]
            cur = conv3x3_relu_nhwc(cur, w9, b_row)
        out[name] = cur
    # back to PyTorch NCHW fp32 for the requested keys
    return [jnp.transpose(out[k], (0, 3, 1, 2)).astype(jnp.float32)
            for k in out_keys]


def make_vgg_forward(out_keys, pool="max"):
    return jax.jit(functools.partial(_vgg_forward_impl,
                                     out_keys=tuple(out_keys), pool=pool))


# ----------------------------------------------------------------------------
# Pure-XLA reference (mirrors the kernels' bf16-operand / f32-acc precision)
# ----------------------------------------------------------------------------
def _reference_forward(params, x_nchw, out_keys, pool="max"):
    cur = jnp.transpose(x_nchw, (0, 2, 3, 1)).astype(jnp.bfloat16)
    out = {}
    for name, cin, cout in VGG_LAYERS:
        if cin is None:
            N, H, W, C = cur.shape
            r = cur.reshape(N, H // 2, 2, W // 2, 2, C)
            if pool == "max":
                cur = jnp.max(r, axis=(2, 4))
            else:
                cur = jnp.mean(r.astype(jnp.float32), axis=(2, 4)).astype(jnp.bfloat16)
        else:
            w, b = params[name]
            wr = jnp.transpose(w.astype(jnp.bfloat16).astype(jnp.float32),
                               (2, 3, 1, 0))                       # HWIO
            y = jax.lax.conv_general_dilated(
                cur.astype(jnp.float32), wr, (1, 1), "SAME",
                dimension_numbers=("NHWC", "HWIO", "NHWC"),
                precision=jax.lax.Precision.HIGHEST)
            cur = jnp.maximum(y + b, 0.0).astype(jnp.bfloat16)
        out[name] = cur
    return [jnp.transpose(out[k], (0, 3, 1, 2)).astype(jnp.float32)
            for k in out_keys]


# ----------------------------------------------------------------------------
if __name__ == "__main__":
    key = jax.random.PRNGKey(0)
    pkey, xkey, akey = jax.random.split(key, 3)
    params = init_params(pkey)
    prepped = prepare_params(params)          # hoisted out of the forward path

    # Quick avg-pool kernel check (the main forward exercises max pooling).
    xa = jax.random.normal(akey, (2, 8, 8, 128), jnp.float32).astype(jnp.bfloat16)
    ya = pool2x2_nhwc(xa, pool="avg")
    ra = jnp.mean(xa.astype(jnp.float32).reshape(2, 4, 2, 4, 2, 128),
                  axis=(2, 4)).astype(jnp.bfloat16)
    assert bool(jnp.all(jnp.abs(ya.astype(jnp.float32) - ra.astype(jnp.float32))
                        <= 0.02)), "avg pool mismatch"

    # NCHW input like the PyTorch module.  Spatial 32 so pool5 -> 1x1.
    x = jax.random.normal(xkey, (2, 3, 32, 32), jnp.float32)

    out_keys = ["r11", "r22", "p3", "r44", "p5"]
    forward = make_vgg_forward(out_keys, pool="max")
    outs = jax.block_until_ready(forward(prepped, x))

    expected = {
        "r11": (2, 64, 32, 32),
        "r22": (2, 128, 16, 16),
        "p3": (2, 256, 4, 4),
        "r44": (2, 512, 4, 4),
        "p5": (2, 512, 1, 1),
    }
    refs = _reference_forward(params, x, out_keys, pool="max")
    for k, o, r in zip(out_keys, outs, refs):
        assert o.shape == expected[k], (k, o.shape, expected[k])
        assert bool(jnp.all(jnp.isfinite(o))), k
        assert bool(jnp.all(o >= 0.0)), k     # post-ReLU / pool of ReLU outputs
        ok = jnp.all(jnp.abs(o - r) <= 0.1 + 0.1 * jnp.abs(r))
        assert bool(ok), ("mismatch vs reference", k)

    print("KERNEL_OK")
</pallas_src>

<mosaic_0001>
module attributes {stable_mosaic.version = 11 : i64} {
  func.func @_pool2x2_kernel(%arg0: i32, %arg1: memref<8x2x4x256xbf16, #tpu.memory_space<vmem>>, %arg2: memref<8x4x128xbf16, #tpu.memory_space<vmem>>) attributes {dimension_semantics = [#tpu.dimension_semantics<parallel>], iteration_bounds = array<i64: 1>, scalar_prefetch = 0 : i64, scratch_operands = 0 : i64, tpu.core_type = #tpu.core_type<tc>, window_params = [{transform_indices = @transform_0, window_bounds = array<i64: 8, 2, 4, 256>}, {transform_indices = @transform_1, window_bounds = array<i64: 8, 4, 128>}]} {
    %c0 = arith.constant 0 : index
    %c0_0 = arith.constant 0 : index
    %c0_1 = arith.constant 0 : index
    %c0_2 = arith.constant 0 : index
    %0 = vector.load %arg1[%c0, %c0_0, %c0_1, %c0_2] : memref<8x2x4x256xbf16, #tpu.memory_space<vmem>>, vector<8x2x4x256xbf16>
    %1 = vector.extract_strided_slice %0 {offsets = [0, 0, 0, 0], sizes = [8, 1, 4, 256], strides = [1, 1, 1, 1]} : vector<8x2x4x256xbf16> to vector<8x1x4x256xbf16>
    %2 = vector.shape_cast %1 : vector<8x1x4x256xbf16> to vector<8x4x256xbf16>
    %3 = vector.extract_strided_slice %0 {offsets = [0, 1, 0, 0], sizes = [8, 1, 4, 256], strides = [1, 1, 1, 1]} : vector<8x2x4x256xbf16> to vector<8x1x4x256xbf16>
    %4 = vector.shape_cast %3 : vector<8x1x4x256xbf16> to vector<8x4x256xbf16>
    %5 = arith.extf %2 : vector<8x4x256xbf16> to vector<8x4x256xf32>
    %6 = arith.extf %4 : vector<8x4x256xbf16> to vector<8x4x256xf32>
    %7 = arith.addf %5, %6 : vector<8x4x256xf32>
    %8 = vector.extract_strided_slice %7 {offsets = [0, 0, 0], sizes = [8, 4, 128], strides = [1, 1, 1]} : vector<8x4x256xf32> to vector<8x4x128xf32>
    %9 = vector.extract_strided_slice %7 {offsets = [0, 0, 128], sizes = [8, 4, 128], strides = [1, 1, 1]} : vector<8x4x256xf32> to vector<8x4x128xf32>
    %10 = arith.addf %8, %9 : vector<8x4x128xf32>
    %cst = arith.constant 2.500000e-01 : f32
    %11 = vector.broadcast %cst : f32 to vector<8x4x128xf32>
    %12 = arith.mulf %10, %11 : vector<8x4x128xf32>
    %13 = arith.truncf %12 : vector<8x4x128xf32> to vector<8x4x128xbf16>
    %c0_3 = arith.constant 0 : index
    %c0_4 = arith.constant 0 : index
    %c0_5 = arith.constant 0 : index
    %14 = vector.load %arg2[%c0_3, %c0_4, %c0_5] : memref<8x4x128xbf16, #tpu.memory_space<vmem>>, vector<8x4x128xbf16>
    tpu.vector_store %arg2[%c0_3, %c0_4, %c0_5], %13 {strides = array<i32>} : memref<8x4x128xbf16, #tpu.memory_space<vmem>>, vector<8x4x128xbf16>,
    return
  }
  func.func @transform_0(%arg0: i32) -> (i32, i32, i32, i32) {
    %c0_i32 = arith.constant 0 : i32
    %c0_i32_0 = arith.constant 0 : i32
    %c0_i32_1 = arith.constant 0 : i32
    %c0_i32_2 = arith.constant 0 : i32
    return %arg0, %c0_i32, %c0_i32_0, %c0_i32_1 : i32, i32, i32, i32
  }
  func.func @transform_1(%arg0: i32) -> (i32, i32, i32) {
    %c0_i32 = arith.constant 0 : i32
    %c0_i32_0 = arith.constant 0 : i32
    %c0_i32_1 = arith.constant 0 : i32
    return %arg0, %c0_i32, %c0_i32_0 : i32, i32, i32
  }
}

</mosaic_0001>

<bundles_post_ra>
// kernel: tpu_custom_call.1
= control target key start
LH: loop header
LB: loop body
LE: loop exit
PB: predicated region body
PF: predicated region fallthrough
CT: control target
= control target key end

     0   :  { %6 = vsyncpa [#allocation3], 0  ;;  %s259_s0 = inlined_call_operand.hbm [shape: bf16[8,2,4,256], index: 0, kind: input, shape index: {}]   ;;  %s260_s1 = inlined_call_operand.hbm [shape: bf16[8,4,128], index: 1, kind: output, shape index: {}]  }
   0x1   :  { %7 = vsyncpa [#allocation4], 0  ;;  %s12_s8 = sshll.u32 %s259_s0, 4  ;;  %s237_s9 = smov [#allocation2]   ;;  %s13_s8 = int_to_ptr.hbm [resolvable:$true] %s12_s8 }
   0x2   :  { %s14_s10 = sshll.u32 %s237_s9, 4  ;;  %s238_s11 = smov 64   ;;  %s15_s10 = int_to_ptr.vmem [resolvable:$true] %s14_s10 }
   0x3   :  { %s239_s12 = smov 4  }
   0x4   :  { %20 = dma.hbm_to_vmem [thread:$0]  %s13_s8, 1024, %s15_s10, [#allocation3], %s238_s11, %s238_s11, %s239_s12  }
   0x5   :  { %233 = dma.done.wait [#allocation3], 1024  }
   0x6   :  { %234 = vsyncadd [#allocation3], 4294966272  ;;  %v141_v0 = vld [vmem:[#allocation2] sm:$0xff]   ;;  %v172_v1 = vld [vmem:[#allocation2 + $0x8] sm:$0xff]   ;;  %s240_s0 = smov [#allocation5]   ;;  %s127_s16 = sshll.u32 %s260_s1, 4  ;;  %s128_s16 = int_to_ptr.hbm [resolvable:$true] %s127_s16 }
   0x7   :  { %v173_v2 = vld [vmem:[#allocation2 + $0x10] sm:$0xff]   ;;  %v142_v3 = vunpack.c.l.bf16 %v141_v0  ;;  %v143_v4 = vunpack.c.h.bf16 %v141_v0  ;;  %v146_v5 = vunpack.c.l.bf16 %v172_v1  ;;  %v147_v6 = vunpack.c.h.bf16 %v172_v1  ;;  %v174_v7 = vld [vmem:[#allocation2 + $0x18] sm:$0xff]   ;;  %v175_v8 = vld [vmem:[#allocation2 + $0x20] sm:$0xff]   ;;  %s125_s13 = sshll.u32 %s240_s0, 4  ;;  %s241_s17 = smov 32   ;;  %s126_s13 = int_to_ptr.vmem [resolvable:$true] %s125_s13 }
   0x8   :  { %v176_v9 = vld [vmem:[#allocation2 + $0x28] sm:$0xff]   ;;  %v150_v10 = vunpack.c.l.bf16 %v173_v2  ;;  %v151_v11 = vunpack.c.h.bf16 %v173_v2  ;;  %v154_v12 = vunpack.c.l.bf16 %v174_v7  ;;  %v155_v13 = vunpack.c.h.bf16 %v174_v7  ;;  %v177_v14 = vld [vmem:[#allocation2 + $0x30] sm:$0xff]   ;;  %v178_v23 = vld [vmem:[#allocation2 + $0x38] sm:$0xff]   ;;  %s242_s18 = smov 2  }
   0x9   :  { %v57_v15 = vadd.f32 %v143_v4, %v142_v3  ;;  %v58_v16 = vadd.f32 %v147_v6, %v146_v5  ;;  %v158_v17 = vunpack.c.l.bf16 %v175_v8  ;;  %v159_v18 = vunpack.c.h.bf16 %v175_v8 }
   0xa   :  { %v59_v19 = vadd.f32 %v151_v11, %v150_v10  ;;  %v60_v20 = vadd.f32 %v155_v13, %v154_v12  ;;  %v162_v21 = vunpack.c.l.bf16 %v176_v9  ;;  %v163_v22 = vunpack.c.h.bf16 %v176_v9 }
   0xb   :  { %v73_v24 = vrot.slane %v57_v15, 4  ;;  %v74_v25 = vrot.slane %v58_v16, 4  ;;  %v61_v26 = vadd.f32 %v159_v18, %v158_v17  ;;  %v166_v27 = vunpack.c.l.bf16 %v177_v14 }
   0xc   :  { %v75_v28 = vrot.slane %v59_v19, 4  ;;  %v76_v29 = vrot.slane %v60_v20, 4  ;;  %v62_v30 = vadd.f32 %v163_v22, %v162_v21  ;;  %v167_v31 = vunpack.c.h.bf16 %v177_v14 }
   0xd   :  { %v89_v32 = vadd.f32 %v73_v24, %v57_v15  ;;  %v90_v33 = vadd.f32 %v74_v25, %v58_v16  ;;  %v77_v34 = vrot.slane %v61_v26, 4  ;;  %v170_v35 = vunpack.c.l.bf16 %v178_v23 }
   0xe   :  { %v91_v36 = vadd.f32 %v75_v28, %v59_v19  ;;  %v92_v37 = vadd.f32 %v76_v29, %v60_v20  ;;  %v78_v38 = vrot.slane %v62_v30, 4  ;;  %v63_v39 = vadd.f32 %v167_v31, %v166_v27 }
   0xf   :  { %v97_v40 = vmul.f32 0.25, %v89_v32  ;;  %v98_v41 = vmul.f32 0.25, %v90_v33  ;;  %v93_v42 = vadd.f32 %v77_v34, %v61_v26  ;;  %v171_v43 = vunpack.c.h.bf16 %v178_v23 }
  0x10   :  { %v99_v44 = vmul.f32 0.25, %v91_v36  ;;  %v100_v45 = vmul.f32 0.25, %v92_v37  ;;  %v94_v46 = vadd.f32 %v78_v38, %v62_v30  ;;  %v79_v47 = vrot.slane %v63_v39, 4 }
  0x11   :  { %v105_v48 = vpack.c.bf16 %v97_v40, %v97_v40  ;;  %v106_v49 = vpack.c.bf16 %v98_v41, %v98_v41  ;;  %v101_v50 = vmul.f32 0.25, %v93_v42  ;;  %v64_v51 = vadd.f32 %v171_v43, %v170_v35 }
  0x12   :  { %v107_v52 = vpack.c.bf16 %v99_v44, %v99_v44  ;;  %v108_v53 = vpack.c.bf16 %v100_v45, %v100_v45  ;;  %v102_v54 = vmul.f32 0.25, %v94_v46  ;;  %v95_v55 = vadd.f32 %v79_v47, %v63_v39 }
  0x13   :  { %113 = vst [vmem:[#allocation5] sm:$0x3] %v105_v48  ;;  %v109_v56 = vpack.c.bf16 %v101_v50, %v101_v50  ;;  %v80_v57 = vrot.slane %v64_v51, 4 }
  0x14   :  { %114 = vst [vmem:[#allocation5 + $0x2] sm:$0x3] %v106_v49  ;;  %v110_v58 = vpack.c.bf16 %v102_v54, %v102_v54  ;;  %v103_v59 = vmul.f32 0.25, %v95_v55 }
  0x15   :  { %115 = vst [vmem:[#allocation5 + $0x4] sm:$0x3] %v107_v52  ;;  %v96_v60 = vadd.f32 %v80_v57, %v64_v51 }
  0x16   :  { %116 = vst [vmem:[#allocation5 + $0x6] sm:$0x3] %v108_v53  ;;  %v111_v61 = vpack.c.bf16 %v103_v59, %v103_v59 }
  0x17   :  { %117 = vst [vmem:[#allocation5 + $0x8] sm:$0x3] %v109_v56  ;;  %v104_v62 = vmul.f32 0.25, %v96_v60 }
  0x18   :  { %118 = vst [vmem:[#allocation5 + $0xa] sm:$0x3] %v110_v58 }
  0x19   :  { %119 = vst [vmem:[#allocation5 + $0xc] sm:$0x3] %v111_v61  ;;  %v112_v63 = vpack.c.bf16 %v104_v62, %v104_v62 }
  0x1b   :  { %120 = vst [vmem:[#allocation5 + $0xe] sm:$0x3] %v112_v63 }
  0x1c   :  { %133 = dma.vmem_to_hbm [thread:$0]  %s126_s13, 256, %s128_s16, [#allocation4], %s241_s17, %s241_s17, %s242_s18  }
  0x1d   :  { %235 = dma.done.wait [#allocation4], 256  }
  0x1e   :  { %236 = vsyncadd [#allocation4], 4294967040 }
  0x1f   :  { %138 = vsyncpa [#allocation3], 1 }
  0x20   :  { %139 = vsyncpa [#allocation4], 1 }

</bundles_post_ra>
